<compile_context>
chip_gen: v7x
topology: tpu7x:2x2x1
jax: 0.10.0
libtpu: 0.0.40
codegen_flags: <defaults>
</compile_context>

<pallas_src>
import functools

import jax
import jax.numpy as jnp
from jax.experimental import pallas as pl
from jax.experimental.pallas import tpu as pltpu


def mlp_branch_kernel(x_ref, w1_ref, b1_ref, w2_ref, b2_ref, w3_ref, b3_ref,
                      out_ref):
    # Row-major: x_ref is (tb, in_dim) f32, weights are (in, out) bf16,
    # biases are (1, out) f32.
    x = x_ref[...].astype(jnp.bfloat16)                                 # (tb, 4)

    # Layer 1: Linear + ReLU   (Dropout(0.3): identity in eval mode)
    h1 = jnp.dot(x, w1_ref[...], preferred_element_type=jnp.float32)   # (tb, 32)
    h1 = jnp.maximum(h1 + b1_ref[...], 0.0).astype(jnp.bfloat16)

    # Layer 2: Linear + ReLU   (Dropout(0.3): identity in eval mode)
    h2 = jnp.dot(h1, w2_ref[...], preferred_element_type=jnp.float32)  # (tb, 16)
    h2 = jnp.maximum(h2 + b2_ref[...], 0.0).astype(jnp.bfloat16)

    # Layer 3: Linear (no activation)
    y = jnp.dot(h2, w3_ref[...], preferred_element_type=jnp.float32)   # (tb, 64)
    out_ref[...] = (y + b3_ref[...]).astype(out_ref.dtype)


def _round_up(a, m):
    return (a + m - 1) // m * m


@functools.partial(jax.jit, static_argnames=("tb", "out_dtype", "training"))
def mlp_branch(x, params, *, tb=8192, out_dtype=jnp.bfloat16, training=False):
    """x: (B, input_dim) f32.  params: W1..W3 bf16 (in, out), b1..b3 f32 (1, out).

    Returns (B, output_dim) in `out_dtype` (bf16 by default; numerics are
    bf16-operand / f32-accumulate, intentionally not bit-identical to f32
    PyTorch Linear layers).
    """
    if training:
        # TODO(synk): training-mode dropout mask via pltpu.prng_random_bits.
        raise NotImplementedError("training-mode dropout not implemented")

    B, in_dim = x.shape
    h1d = params["W1"].shape[1]
    h2d = params["W2"].shape[1]
    out_dim = params["W3"].shape[1]

    # --- Tile / grid selection: minimal padding, >=2 steps when possible ---
    bp = _round_up(B, 128)                          # minimal 128-row padding
    tb = max(128, min(_round_up(tb, 128), bp))
    if bp >= 256:                                   # v7x: give both TCs work
        tb = min(tb, _round_up(pl.cdiv(bp, 2), 128))
    g = pl.cdiv(bp, tb)
    tb = _round_up(pl.cdiv(bp, g), 128)             # rebalance: waste < 128*g rows
    bp = g * tb

    if bp != B:
        x = jnp.pad(x, ((0, bp - B), (0, 0)))

    resident = lambda arr: pl.BlockSpec(arr.shape, lambda i: (0, 0))

    # VMEM budget from actual buffers: double-buffered x/out blocks plus the
    # f32/bf16 h1/h2/y temporaries, with headroom; capped for v7x (64 MiB phys).
    out_bytes = jnp.dtype(out_dtype).itemsize
    blk_bytes = tb * (in_dim * 4 + out_dim * out_bytes)
    tmp_bytes = tb * (in_dim * 2 + h1d * 6 + h2d * 6 + out_dim * 4)
    vmem_limit = int(min(56 * 1024 * 1024,
                         max(32 * 1024 * 1024,
                             2 * blk_bytes + tmp_bytes + (8 << 20))))

    out = pl.pallas_call(
        mlp_branch_kernel,
        out_shape=jax.ShapeDtypeStruct((bp, out_dim), out_dtype),
        grid_spec=pl.GridSpec(
            grid=(g,),
            in_specs=[
                pl.BlockSpec((tb, in_dim), lambda i: (i, 0)),
                resident(params["W1"]), resident(params["b1"]),
                resident(params["W2"]), resident(params["b2"]),
                resident(params["W3"]), resident(params["b3"]),
            ],
            out_specs=pl.BlockSpec((tb, out_dim), lambda i: (i, 0)),
        ),
        compiler_params=pltpu.CompilerParams(
            dimension_semantics=("parallel",),      # shard batch over TCs (v7x)
            vmem_limit_bytes=vmem_limit,
        ),
    )(x, params["W1"], params["b1"], params["W2"], params["b2"],
      params["W3"], params["b3"])

    return out[:B]


def init_params(key, input_dim=4, hidden_dims=(32, 16), output_dim=64):
    """nn.Linear-style uniform(-1/sqrt(fan_in), +) init.

    Weights are stored TRANSPOSED relative to PyTorch, i.e. (in_features,
    out_features), in bf16 (MXU operands).  Biases are (1, out_features) f32.
    """
    dims = [input_dim] + list(hidden_dims) + [output_dim]
    params = {}
    for i in range(len(dims) - 1):
        fan_in, fan_out = dims[i], dims[i + 1]
        key, kw, kb = jax.random.split(key, 3)
        bound = 1.0 / (fan_in ** 0.5)
        W = jax.random.uniform(kw, (fan_in, fan_out), jnp.float32,
                               minval=-bound, maxval=bound)
        b = jax.random.uniform(kb, (1, fan_out), jnp.float32,
                               minval=-bound, maxval=bound)
        params[f"W{i + 1}"] = W.astype(jnp.bfloat16)
        params[f"b{i + 1}"] = b
    return params


def mlp_branch_ref(x, params):
    """Plain-JAX reference with the same numerics (bf16 operands, f32 accum),
    eval-mode dropout = identity.  Output kept in f32."""
    xb = x.astype(jnp.bfloat16)
    h1 = jnp.maximum(
        jnp.dot(xb, params["W1"], preferred_element_type=jnp.float32)
        + params["b1"], 0.0).astype(jnp.bfloat16)
    h2 = jnp.maximum(
        jnp.dot(h1, params["W2"], preferred_element_type=jnp.float32)
        + params["b2"], 0.0).astype(jnp.bfloat16)
    return jnp.dot(h2, params["W3"], preferred_element_type=jnp.float32) + params["b3"]


if __name__ == "__main__":
    key = jax.random.PRNGKey(0)
    key, kx, kx2 = jax.random.split(key, 3)

    input_dim, output_dim = 4, 64
    params = init_params(key, input_dim=input_dim,
                         hidden_dims=(32, 16), output_dim=output_dim)

    # Small primary test (batch=8): single grid step.
    batch = 8
    x = jax.random.normal(kx, (batch, input_dim), jnp.float32)
    out = jax.block_until_ready(mlp_branch(x, params))
    ref = mlp_branch_ref(x, params)
    assert out.shape == (batch, output_dim), out.shape
    assert jnp.allclose(out.astype(jnp.float32), ref, atol=2e-2, rtol=2e-2), (
        "mismatch vs reference (batch=8): max abs diff = %e"
        % float(jnp.max(jnp.abs(out.astype(jnp.float32) - ref))))

    # Secondary test (batch=1000): exercises padding and a 2-step parallel grid.
    batch2 = 1000
    x2 = jax.random.normal(kx2, (batch2, input_dim), jnp.float32)
    out2 = jax.block_until_ready(mlp_branch(x2, params))
    ref2 = mlp_branch_ref(x2, params)
    assert out2.shape == (batch2, output_dim), out2.shape
    assert jnp.allclose(out2.astype(jnp.float32), ref2, atol=2e-2, rtol=2e-2), (
        "mismatch vs reference (batch=1000): max abs diff = %e"
        % float(jnp.max(jnp.abs(out2.astype(jnp.float32) - ref2))))

    print("KERNEL_OK")
</pallas_src>

<mosaic_0001>
module attributes {stable_mosaic.version = 11 : i64} {
  func.func @mlp_branch_kernel(%arg0: i32, %arg1: memref<128x4xf32, #tpu.memory_space<vmem>>, %arg2: memref<4x32xbf16, #tpu.memory_space<vmem>>, %arg3: memref<1x32xf32, #tpu.memory_space<vmem>>, %arg4: memref<32x16xbf16, #tpu.memory_space<vmem>>, %arg5: memref<1x16xf32, #tpu.memory_space<vmem>>, %arg6: memref<16x64xbf16, #tpu.memory_space<vmem>>, %arg7: memref<1x64xf32, #tpu.memory_space<vmem>>, %arg8: memref<128x64xbf16, #tpu.memory_space<vmem>>) attributes {dimension_semantics = [#tpu.dimension_semantics<parallel>], iteration_bounds = array<i64: 1>, scalar_prefetch = 0 : i64, scratch_operands = 0 : i64, tpu.core_type = #tpu.core_type<tc>, window_params = [{transform_indices = @transform_0, window_bounds = array<i64: 128, 4>}, {pipeline_mode = #tpu.pipeline_mode<synchronous>, transform_indices = @transform_1, window_bounds = array<i64: 4, 32>}, {pipeline_mode = #tpu.pipeline_mode<synchronous>, transform_indices = @transform_2, window_bounds = array<i64: 1, 32>}, {pipeline_mode = #tpu.pipeline_mode<synchronous>, transform_indices = @transform_3, window_bounds = array<i64: 32, 16>}, {pipeline_mode = #tpu.pipeline_mode<synchronous>, transform_indices = @transform_4, window_bounds = array<i64: 1, 16>}, {pipeline_mode = #tpu.pipeline_mode<synchronous>, transform_indices = @transform_5, window_bounds = array<i64: 16, 64>}, {pipeline_mode = #tpu.pipeline_mode<synchronous>, transform_indices = @transform_6, window_bounds = array<i64: 1, 64>}, {transform_indices = @transform_7, window_bounds = array<i64: 128, 64>}]} {
    %c0 = arith.constant 0 : index
    %c0_0 = arith.constant 0 : index
    %0 = vector.load %arg1[%c0, %c0_0] : memref<128x4xf32, #tpu.memory_space<vmem>>, vector<128x4xf32>
    %1 = arith.truncf %0 : vector<128x4xf32> to vector<128x4xbf16>
    %c0_1 = arith.constant 0 : index
    %c0_2 = arith.constant 0 : index
    %2 = vector.load %arg2[%c0_1, %c0_2] : memref<4x32xbf16, #tpu.memory_space<vmem>>, vector<4x32xbf16>
    %cst = arith.constant dense<0.000000e+00> : vector<128x32xf32>
    %3 = tpu.matmul %1, %2, %cst {dimension_numbers = #tpu.dot_dimension_numbers<[1], [0], [0], [1], [0, 0, 1, 1], [], []>} : vector<128x4xbf16>, vector<4x32xbf16>, vector<128x32xf32> -> vector<128x32xf32>
    %c0_3 = arith.constant 0 : index
    %c0_4 = arith.constant 0 : index
    %4 = vector.load %arg3[%c0_3, %c0_4] : memref<1x32xf32, #tpu.memory_space<vmem>>, vector<1x32xf32>
    %5 = vector.broadcast %4 : vector<1x32xf32> to vector<128x32xf32>
    %6 = arith.addf %3, %5 : vector<128x32xf32>
    %cst_5 = arith.constant 0.000000e+00 : f32
    %7 = vector.broadcast %cst_5 : f32 to vector<128x32xf32>
    %8 = arith.maximumf %6, %7 : vector<128x32xf32>
    %9 = arith.truncf %8 : vector<128x32xf32> to vector<128x32xbf16>
    %c0_6 = arith.constant 0 : index
    %c0_7 = arith.constant 0 : index
    %10 = vector.load %arg4[%c0_6, %c0_7] : memref<32x16xbf16, #tpu.memory_space<vmem>>, vector<32x16xbf16>
    %cst_8 = arith.constant dense<0.000000e+00> : vector<128x16xf32>
    %11 = tpu.matmul %9, %10, %cst_8 {dimension_numbers = #tpu.dot_dimension_numbers<[1], [0], [0], [1], [0, 0, 1, 1], [], []>} : vector<128x32xbf16>, vector<32x16xbf16>, vector<128x16xf32> -> vector<128x16xf32>
    %c0_9 = arith.constant 0 : index
    %c0_10 = arith.constant 0 : index
    %12 = vector.load %arg5[%c0_9, %c0_10] : memref<1x16xf32, #tpu.memory_space<vmem>>, vector<1x16xf32>
    %13 = vector.broadcast %12 : vector<1x16xf32> to vector<128x16xf32>
    %14 = arith.addf %11, %13 : vector<128x16xf32>
    %cst_11 = arith.constant 0.000000e+00 : f32
    %15 = vector.broadcast %cst_11 : f32 to vector<128x16xf32>
    %16 = arith.maximumf %14, %15 : vector<128x16xf32>
    %17 = arith.truncf %16 : vector<128x16xf32> to vector<128x16xbf16>
    %c0_12 = arith.constant 0 : index
    %c0_13 = arith.constant 0 : index
    %18 = vector.load %arg6[%c0_12, %c0_13] : memref<16x64xbf16, #tpu.memory_space<vmem>>, vector<16x64xbf16>
    %cst_14 = arith.constant dense<0.000000e+00> : vector<128x64xf32>
    %19 = tpu.matmul %17, %18, %cst_14 {dimension_numbers = #tpu.dot_dimension_numbers<[1], [0], [0], [1], [0, 0, 1, 1], [], []>} : vector<128x16xbf16>, vector<16x64xbf16>, vector<128x64xf32> -> vector<128x64xf32>
    %c0_15 = arith.constant 0 : index
    %c0_16 = arith.constant 0 : index
    %20 = vector.load %arg7[%c0_15, %c0_16] : memref<1x64xf32, #tpu.memory_space<vmem>>, vector<1x64xf32>
    %21 = vector.broadcast %20 : vector<1x64xf32> to vector<128x64xf32>
    %22 = arith.addf %19, %21 : vector<128x64xf32>
    %23 = arith.truncf %22 : vector<128x64xf32> to vector<128x64xbf16>
    %c0_17 = arith.constant 0 : index
    %c0_18 = arith.constant 0 : index
    %24 = vector.load %arg8[%c0_17, %c0_18] : memref<128x64xbf16, #tpu.memory_space<vmem>>, vector<128x64xbf16>
    tpu.vector_store %arg8[%c0_17, %c0_18], %23 {strides = array<i32>} : memref<128x64xbf16, #tpu.memory_space<vmem>>, vector<128x64xbf16>,
    return
  }
  func.func @transform_0(%arg0: i32) -> (i32, i32) {
    %c0_i32 = arith.constant 0 : i32
    %c0_i32_0 = arith.constant 0 : i32
    return %arg0, %c0_i32 : i32, i32
  }
  func.func @transform_1(%arg0: i32) -> (i32, i32) {
    %c0_i32 = arith.constant 0 : i32
    %c0_i32_0 = arith.constant 0 : i32
    %c0_i32_1 = arith.constant 0 : i32
    return %c0_i32, %c0_i32_0 : i32, i32
  }
  func.func @transform_2(%arg0: i32) -> (i32, i32) {
    %c0_i32 = arith.constant 0 : i32
    %c0_i32_0 = arith.constant 0 : i32
    %c0_i32_1 = arith.constant 0 : i32
    return %c0_i32, %c0_i32_0 : i32, i32
  }
  func.func @transform_3(%arg0: i32) -> (i32, i32) {
    %c0_i32 = arith.constant 0 : i32
    %c0_i32_0 = arith.constant 0 : i32
    %c0_i32_1 = arith.constant 0 : i32
    return %c0_i32, %c0_i32_0 : i32, i32
  }
  func.func @transform_4(%arg0: i32) -> (i32, i32) {
    %c0_i32 = arith.constant 0 : i32
    %c0_i32_0 = arith.constant 0 : i32
    %c0_i32_1 = arith.constant 0 : i32
    return %c0_i32, %c0_i32_0 : i32, i32
  }
  func.func @transform_5(%arg0: i32) -> (i32, i32) {
    %c0_i32 = arith.constant 0 : i32
    %c0_i32_0 = arith.constant 0 : i32
    %c0_i32_1 = arith.constant 0 : i32
    return %c0_i32, %c0_i32_0 : i32, i32
  }
  func.func @transform_6(%arg0: i32) -> (i32, i32) {
    %c0_i32 = arith.constant 0 : i32
    %c0_i32_0 = arith.constant 0 : i32
    %c0_i32_1 = arith.constant 0 : i32
    return %c0_i32, %c0_i32_0 : i32, i32
  }
  func.func @transform_7(%arg0: i32) -> (i32, i32) {
    %c0_i32 = arith.constant 0 : i32
    %c0_i32_0 = arith.constant 0 : i32
    return %arg0, %c0_i32 : i32, i32
  }
}

</mosaic_0001>

<bundles_post_ra>
// kernel: mlp_branch.1
= control target key start
LH: loop header
LB: loop body
LE: loop exit
PB: predicated region body
PF: predicated region fallthrough
CT: control target
= control target key end

     0   :  { %vm84_vm0 = vcmask 1041408   ;;  %vm59_vm1 = vcmask 31744   ;;  %vm232_vm2 = vcmask 261120   ;;  %vm393_vm3 = vcmask 130048   ;;  %s950_s1 = inlined_call_operand.vmem [shape: bf16[4,32], index: 1, kind: input, shape index: {}]   ;;  %s951_s0 = inlined_call_operand.vmem [shape: f32[128,4], index: 0, kind: input, shape index: {}]   ;;  %s952_s3 = inlined_call_operand.vmem [shape: bf16[32,16], index: 3, kind: input, shape index: {}]   ;;  %s953_s5 = inlined_call_operand.vmem [shape: bf16[16,64], index: 5, kind: input, shape index: {}]   ;;  %s954_s2 = inlined_call_operand.vmem [shape: f32[1,32], index: 2, kind: input, shape index: {}]   ;;  %s955_s4 = inlined_call_operand.vmem [shape: f32[1,16], index: 4, kind: input, shape index: {}]   ;;  %s956_s6 = inlined_call_operand.vmem [shape: f32[1,64], index: 6, kind: input, shape index: {}]   ;;  %s957_s7 = inlined_call_operand.vmem [shape: bf16[128,64], index: 7, kind: output, shape index: {}]  }
   0x1   :  { %v51_v0 = vld [vmem:[%s950_s1] sm:$0x3]  ;;  %v28_v2 = vld [vmem:[%s951_s0 + $0x8] sm:$0xff]  ;;  %v29_v5 = vld [vmem:[%s951_s0 + $0x10] sm:$0xff]  ;;  %vm579_vm4 = vcmask 519168  }
   0x2   :  { %v27_v1 = vld [vmem:[%s951_s0] sm:$0xff]  ;;  %748 = vmatprep.subr.msk.bf16.mxu0 %vm84_vm0, %v51_v0  ;;  %v86_v3 = vsel %vm84_vm0, %v51_v0, 0  ;;  %v30_v6 = vld [vmem:[%s951_s0 + $0x18] sm:$0xff]  ;;  %749 = vmatprep.subr.msk.bf16.mxu1 %vm84_vm0, %v51_v0  ;;  %v32_v9 = vld [vmem:[%s951_s0 + $0x28] sm:$0xff] }
   0x3   :  { %v43_v4 = vpack.c.bf16 %v28_v2, %v27_v1  ;;  %v31_v7 = vld [vmem:[%s951_s0 + $0x20] sm:$0xff]  ;;  %691 = vmatpush3.bf16.msra.mxu0 %v86_v3  ;;  %v44_v8 = vpack.c.bf16 %v30_v6, %v29_v5  ;;  %747 = vmatpush3.bf16.msra.mxu1 %v86_v3  ;;  %v36_v12 = vld [vmem:[%s951_s0 + $0x48] sm:$0xff]  ;;  %v37_v13 = vld [vmem:[%s951_s0 + $0x50] sm:$0xff] }
   0x4   :  { %v45_v10 = vpack.c.bf16 %v32_v9, %v31_v7  ;;  %v35_v11 = vld [vmem:[%s951_s0 + $0x40] sm:$0xff]  ;;  %v38_v15 = vld [vmem:[%s951_s0 + $0x58] sm:$0xff]  ;;  %v40_v17 = vld [vmem:[%s951_s0 + $0x68] sm:$0xff] }
   0x5   :  { %692 = vmatprep.mubr.msk.bf16.mxu0 %vm59_vm1, %v43_v4  ;;  %v47_v14 = vpack.c.bf16 %v36_v12, %v35_v11  ;;  %v39_v16 = vld [vmem:[%s951_s0 + $0x60] sm:$0xff]  ;;  %v33_v18 = vld [vmem:[%s951_s0 + $0x30] sm:$0xff]  ;;  %v34_v19 = vld [vmem:[%s951_s0 + $0x38] sm:$0xff]  ;;  %v48_v20 = vpack.c.bf16 %v38_v15, %v37_v13 }
   0x6   :  { %693 = vmatmul.mubr.msk.bf16.vlgmr.msra.gmra.mrb[0].mxu0 %vm59_vm1, %v44_v8  ;;  %v49_v21 = vpack.c.bf16 %v40_v17, %v39_v16  ;;  %v750_v22 = vld [vmem:[%s952_s3] sm:$0xff]   ;;  %v41_v23 = vld [vmem:[%s951_s0 + $0x70] sm:$0xff]  ;;  %v42_v24 = vld [vmem:[%s951_s0 + $0x78] sm:$0xff]  ;;  %v46_v25 = vpack.c.bf16 %v34_v19, %v33_v18 }
   0x7   :  { %696 = vmatprep.mubr.msk.bf16.mxu0 %vm59_vm1, %v45_v10  ;;  %700 = vmatprep.mubr.msk.bf16.mxu1 %vm59_vm1, %v47_v14  ;;  %v50_v26 = vpack.c.bf16 %v42_v24, %v41_v23  ;;  %v751_v27 = vld [vmem:[%s952_s3 + $0x8] sm:$0xff]   ;;  %v752_v28 = vld [vmem:[%s953_s5] sm:$0xff]  }
   0x8   :  { %701 = vmatmul.mubr.msk.bf16.vlgmr.msra.gmra.mrb[0].mxu1 %vm59_vm1, %v48_v20  ;;  %708 = vmatprep.subr.bf16.mxu1 %v750_v22  ;;  %v600_v29 = vld [vmem:[%s954_s2] ss:$0 sm:$0xff] }
   0x9   :  { %704 = vmatprep.mubr.msk.bf16.mxu1 %vm59_vm1, %v49_v21  ;;  %709 = vmatpush3.bf16.msra.mxu1 %v750_v22  ;;  %v609_v22 = vld [vmem:[%s955_s4] ss:$0 sm:$0xff] }
   0xa   :  { %710 = vmatprep.subr.bf16.mxu1 %v751_v27  ;;  %728 = vmatprep.subr.bf16.mxu0 %v752_v28 }
   0xb   :  { %729 = vmatpush3.bf16.msra.mxu0 %v752_v28 }
   0xd   :  { %711 = vmatpush3.bf16.msra.mxu1 %v751_v27 }
   0xe   :  { %697 = vmatmul.mubr.msk.bf16.gmra.mrb[4].mxu0 %vm59_vm1, %v46_v25 }
  0x10   :  { %705 = vmatmul.mubr.msk.bf16.gmra.mrb[4].mxu1 %vm59_vm1, %v50_v26 }
  0xd9   :  { %v694_v30 = vpop.f32.mrb[0].mxu0 }
  0xda   :  { %v131_v31 = vadd.f32 %v694_v30, %v600_v29  ;;  %v122_v32 = vpop.f32.mrb[1].mxu0 }
  0xdb   :  { %v123_v33 = vadd.f32 %v600_v29, %v122_v32  ;;  %v695_v34 = vpop.f32.mrb[2].mxu0  ;;  %v702_v35 = vpop.f32.mrb[0].mxu1 }
  0xdc   :  { %v134_v36 = vadd.f32 %v695_v34, %v600_v29  ;;  %v125_v37 = vpop.f32.mrb[3].mxu0  ;;  %v163_v38 = vadd.f32 %v702_v35, %v600_v29  ;;  %v154_v39 = vpop.f32.mrb[1].mxu1  ;;  %v187_v43 = vmax.f32 %v131_v31, 0.0 }
  0xdd   :  { %v126_v40 = vadd.f32 %v600_v29, %v125_v37  ;;  %v155_v41 = vadd.f32 %v600_v29, %v154_v39  ;;  %v703_v42 = vpop.f32.mrb[2].mxu1  ;;  %v185_v48 = vmax.f32 %v123_v33, 0.0 }
  0xde   :  { %v188_v44 = vmax.f32 %v134_v36, 0.0  ;;  %v195_v45 = vmax.f32 %v163_v38, 0.0  ;;  %v166_v46 = vadd.f32 %v703_v42, %v600_v29  ;;  %v157_v47 = vpop.f32.mrb[3].mxu1 }
  0xdf   :  { %v186_v49 = vmax.f32 %v126_v40, 0.0  ;;  %v193_v50 = vmax.f32 %v155_v41, 0.0  ;;  %v158_v51 = vadd.f32 %v600_v29, %v157_v47 }
  0xe0   :  { %v202_v52 = vpack.c.bf16 %v188_v44, %v187_v43  ;;  %v196_v53 = vmax.f32 %v166_v46, 0.0 }
  0xe1   :  { %v201_v54 = vpack.c.bf16 %v186_v49, %v185_v48  ;;  %v698_v55 = vpop.f32.mrb[4].mxu0  ;;  %v194_v56 = vmax.f32 %v158_v51, 0.0 }
  0xe2   :  { %v147_v57 = vadd.f32 %v698_v55, %v600_v29  ;;  %v138_v58 = vpop.f32.mrb[5].mxu0  ;;  %v206_v59 = vpack.c.bf16 %v196_v53, %v195_v45 }
  0xe3   :  { %v139_v60 = vadd.f32 %v600_v29, %v138_v58  ;;  %v699_v61 = vpop.f32.mrb[6].mxu0  ;;  %712 = vmatprep.mubr.msk.bf16.mxu1 %vm232_vm2, %v201_v54  ;;  %v205_v62 = vpack.c.bf16 %v194_v56, %v193_v50  ;;  %v706_v63 = vpop.f32.mrb[4].mxu1 }
  0xe4   :  { %v150_v0 = vadd.f32 %v699_v61, %v600_v29  ;;  %v141_v1 = vpop.f32.mrb[7].mxu0  ;;  %713 = vmatmul.mubr.msk.bf16.vlgmr.msra.gmra.mrb[8].mxu1 %vm232_vm2, %v202_v52  ;;  %v179_v2 = vadd.f32 %v706_v63, %v600_v29  ;;  %v170_v3 = vpop.f32.mrb[5].mxu1  ;;  %v191_v7 = vmax.f32 %v147_v57, 0.0 }
  0xe5   :  { %v142_v4 = vadd.f32 %v600_v29, %v141_v1  ;;  %v171_v5 = vadd.f32 %v600_v29, %v170_v3  ;;  %v707_v6 = vpop.f32.mrb[6].mxu1  ;;  %v189_v12 = vmax.f32 %v139_v60, 0.0 }
  0xe6   :  { %v192_v8 = vmax.f32 %v150_v0, 0.0  ;;  %v199_v9 = vmax.f32 %v179_v2, 0.0  ;;  %v182_v10 = vadd.f32 %v707_v6, %v600_v29  ;;  %v173_v11 = vpop.f32.mrb[7].mxu1 }
  0xe7   :  { %v190_v13 = vmax.f32 %v142_v4, 0.0  ;;  %v197_v14 = vmax.f32 %v171_v5, 0.0  ;;  %v174_v15 = vadd.f32 %v600_v29, %v173_v11 }
  0xe8   :  { %v204_v16 = vpack.c.bf16 %v192_v8, %v191_v7  ;;  %v200_v17 = vmax.f32 %v182_v10, 0.0 }
  0xe9   :  { %v203_v18 = vpack.c.bf16 %v190_v13, %v189_v12  ;;  %v198_v19 = vmax.f32 %v174_v15, 0.0  ;;  %v620_v15 = vld [vmem:[%s956_s6] ss:$0 sm:$0xff] }
  0xea   :  { %v208_v20 = vpack.c.bf16 %v200_v17, %v199_v9 }
  0xeb   :  { %716 = vmatprep.mubr.msk.bf16.mxu1 %vm232_vm2, %v203_v18  ;;  %v207_v21 = vpack.c.bf16 %v198_v19, %v197_v14 }
  0xec   :  { %717 = vmatmul.mubr.msk.bf16.gmra.mrb[12].mxu1 %vm232_vm2, %v204_v16 }
  0xed   :  { %720 = vmatprep.mubr.msk.bf16.mxu1 %vm232_vm2, %v205_v62 }
  0xf4   :  { %721 = vmatmul.mubr.msk.bf16.gmra.mrb[16].mxu1 %vm232_vm2, %v206_v59 }
  0xf5   :  { %724 = vmatprep.mubr.msk.bf16.mxu1 %vm232_vm2, %v207_v21 }
  0xfc   :  { %725 = vmatmul.mubr.msk.bf16.gmra.mrb[20].mxu1 %vm232_vm2, %v208_v20 }
 0x1b7   :  { %v714_v23 = vpop.f32.mrb[8].mxu1 }
 0x1b8   :  { %v300_v24 = vadd.f32 %v714_v23, %v609_v22  ;;  %v291_v25 = vpop.f32.mrb[9].mxu1 }
 0x1b9   :  { %v292_v26 = vadd.f32 %v609_v22, %v291_v25  ;;  %v715_v27 = vpop.f32.mrb[10].mxu1 }
 0x1ba   :  { %v303_v28 = vadd.f32 %v715_v27, %v609_v22  ;;  %v294_v29 = vpop.f32.mrb[11].mxu1  ;;  %v356_v31 = vmax.f32 %v300_v24, 0.0 }
 0x1bb   :  { %v295_v30 = vadd.f32 %v609_v22, %v294_v29  ;;  %v354_v33 = vmax.f32 %v292_v26, 0.0 }
 0x1bc   :  { %v357_v32 = vmax.f32 %v303_v28, 0.0 }
 0x1bd   :  { %v355_v34 = vmax.f32 %v295_v30, 0.0 }
 0x1be   :  { %v371_v35 = vpack.c.bf16 %v357_v32, %v356_v31 }
 0x1bf   :  { %v370_v36 = vpack.c.bf16 %v355_v34, %v354_v33  ;;  %v718_v37 = vpop.f32.mrb[12].mxu1 }
 0x1c0   :  { %v316_v38 = vadd.f32 %v718_v37, %v609_v22  ;;  %v307_v39 = vpop.f32.mrb[13].mxu1 }
 0x1c1   :  { %v308_v40 = vadd.f32 %v609_v22, %v307_v39  ;;  %v719_v41 = vpop.f32.mrb[14].mxu1  ;;  %730 = vmatprep.mubr.msk.bf16.mxu0 %vm393_vm3, %v370_v36 }
 0x1c2   :  { %v319_v42 = vadd.f32 %v719_v41, %v609_v22  ;;  %v310_v43 = vpop.f32.mrb[15].mxu1  ;;  %731 = vmatmul.mubr.msk.bf16.vlgmr.msra.gmra.mrb[8].mxu0 %vm393_vm3, %v371_v35  ;;  %v360_v45 = vmax.f32 %v316_v38, 0.0 }
 0x1c3   :  { %v311_v44 = vadd.f32 %v609_v22, %v310_v43  ;;  %v358_v47 = vmax.f32 %v308_v40, 0.0 }
 0x1c4   :  { %v361_v46 = vmax.f32 %v319_v42, 0.0 }
 0x1c5   :  { %v359_v48 = vmax.f32 %v311_v44, 0.0 }
 0x1c6   :  { %v373_v49 = vpack.c.bf16 %v361_v46, %v360_v45 }
 0x1c7   :  { %v372_v50 = vpack.c.bf16 %v359_v48, %v358_v47  ;;  %v722_v51 = vpop.f32.mrb[16].mxu1 }
 0x1c8   :  { %v332_v52 = vadd.f32 %v722_v51, %v609_v22  ;;  %v323_v53 = vpop.f32.mrb[17].mxu1 }
 0x1c9   :  { %v324_v54 = vadd.f32 %v609_v22, %v323_v53  ;;  %v723_v55 = vpop.f32.mrb[18].mxu1  ;;  %734 = vmatprep.mubr.msk.bf16.mxu0 %vm393_vm3, %v372_v50 }
 0x1ca   :  { %v335_v56 = vadd.f32 %v723_v55, %v609_v22  ;;  %v326_v57 = vpop.f32.mrb[19].mxu1  ;;  %735 = vmatmul.mubr.msk.bf16.gmra.mrb[12].mxu0 %vm393_vm3, %v373_v49  ;;  %v364_v59 = vmax.f32 %v332_v52, 0.0 }
 0x1cb   :  { %v327_v58 = vadd.f32 %v609_v22, %v326_v57  ;;  %v362_v61 = vmax.f32 %v324_v54, 0.0 }
 0x1cc   :  { %v365_v60 = vmax.f32 %v335_v56, 0.0 }
 0x1cd   :  { %v363_v62 = vmax.f32 %v327_v58, 0.0 }
 0x1ce   :  { %v375_v63 = vpack.c.bf16 %v365_v60, %v364_v59 }
 0x1cf   :  { %v374_v0 = vpack.c.bf16 %v363_v62, %v362_v61  ;;  %v726_v1 = vpop.f32.mrb[20].mxu1 }
 0x1d0   :  { %v348_v2 = vadd.f32 %v726_v1, %v609_v22  ;;  %v339_v3 = vpop.f32.mrb[21].mxu1 }
 0x1d1   :  { %v340_v4 = vadd.f32 %v609_v22, %v339_v3  ;;  %v727_v5 = vpop.f32.mrb[22].mxu1  ;;  %738 = vmatprep.mubr.msk.bf16.mxu0 %vm393_vm3, %v374_v0 }
 0x1d2   :  { %v351_v6 = vadd.f32 %v727_v5, %v609_v22  ;;  %v342_v7 = vpop.f32.mrb[23].mxu1  ;;  %739 = vmatmul.mubr.msk.bf16.gmra.mrb[16].mxu0 %vm393_vm3, %v375_v63  ;;  %v368_v9 = vmax.f32 %v348_v2, 0.0 }
 0x1d3   :  { %v343_v8 = vadd.f32 %v609_v22, %v342_v7  ;;  %v366_v11 = vmax.f32 %v340_v4, 0.0 }
 0x1d4   :  { %v369_v10 = vmax.f32 %v351_v6, 0.0 }
 0x1d5   :  { %v367_v12 = vmax.f32 %v343_v8, 0.0 }
 0x1d6   :  { %v377_v13 = vpack.c.bf16 %v369_v10, %v368_v9 }
 0x1d7   :  { %v376_v14 = vpack.c.bf16 %v367_v12, %v366_v11 }
 0x1d9   :  { %742 = vmatprep.mubr.msk.bf16.mxu0 %vm393_vm3, %v376_v14 }
 0x1da   :  { %743 = vmatmul.mubr.msk.bf16.gmra.mrb[20].mxu0 %vm393_vm3, %v377_v13 }
 0x295   :  { %v732_v16 = vpop.f32.mrb[8].mxu0 }
 0x296   :  { %v461_v17 = vadd.f32 %v732_v16, %v620_v15  ;;  %v452_v18 = vpop.f32.mrb[9].mxu0 }
 0x297   :  { %v453_v19 = vadd.f32 %v620_v15, %v452_v18  ;;  %v733_v20 = vpop.f32.mrb[10].mxu0 }
 0x298   :  { %v648_v21 = vpack.c.bf16 %v461_v17, %v461_v17  ;;  %v464_v22 = vadd.f32 %v733_v20, %v620_v15  ;;  %v455_v23 = vpop.f32.mrb[11].mxu0 }
 0x299   :  { %v646_v24 = vpack.c.bf16 %v453_v19, %v453_v19  ;;  %v456_v25 = vadd.f32 %v620_v15, %v455_v23 }
 0x29a   :  { %582 = vst.msk [vmem:[%s957_s7 + $0x8] sm:$0xf] %vm579_vm4, %v648_v21  ;;  %v649_v26 = vpack.c.bf16 %v464_v22, %v464_v22 }
 0x29b   :  { %580 = vst.msk [vmem:[%s957_s7] sm:$0xf] %vm579_vm4, %v646_v24  ;;  %v647_v27 = vpack.c.bf16 %v456_v25, %v456_v25 }
 0x29c   :  { %583 = vst.msk [vmem:[%s957_s7 + $0xc] sm:$0xf] %vm579_vm4, %v649_v26 }
 0x29d   :  { %581 = vst.msk [vmem:[%s957_s7 + $0x4] sm:$0xf] %vm579_vm4, %v647_v27  ;;  %v736_v28 = vpop.f32.mrb[12].mxu0 }
 0x29e   :  { %v477_v29 = vadd.f32 %v736_v28, %v620_v15  ;;  %v468_v30 = vpop.f32.mrb[13].mxu0 }
 0x29f   :  { %v469_v31 = vadd.f32 %v620_v15, %v468_v30  ;;  %v737_v32 = vpop.f32.mrb[14].mxu0 }
 0x2a0   :  { %v652_v33 = vpack.c.bf16 %v477_v29, %v477_v29  ;;  %v480_v34 = vadd.f32 %v737_v32, %v620_v15  ;;  %v471_v35 = vpop.f32.mrb[15].mxu0 }
 0x2a1   :  { %v650_v36 = vpack.c.bf16 %v469_v31, %v469_v31  ;;  %v472_v37 = vadd.f32 %v620_v15, %v471_v35 }
 0x2a2   :  { %586 = vst.msk [vmem:[%s957_s7 + $0x18] sm:$0xf] %vm579_vm4, %v652_v33  ;;  %v653_v38 = vpack.c.bf16 %v480_v34, %v480_v34 }
 0x2a3   :  { %584 = vst.msk [vmem:[%s957_s7 + $0x10] sm:$0xf] %vm579_vm4, %v650_v36  ;;  %v651_v39 = vpack.c.bf16 %v472_v37, %v472_v37 }
 0x2a4   :  { %587 = vst.msk [vmem:[%s957_s7 + $0x1c] sm:$0xf] %vm579_vm4, %v653_v38 }
 0x2a5   :  { %585 = vst.msk [vmem:[%s957_s7 + $0x14] sm:$0xf] %vm579_vm4, %v651_v39  ;;  %v740_v40 = vpop.f32.mrb[16].mxu0 }
 0x2a6   :  { %v493_v41 = vadd.f32 %v740_v40, %v620_v15  ;;  %v484_v42 = vpop.f32.mrb[17].mxu0 }
 0x2a7   :  { %v485_v43 = vadd.f32 %v620_v15, %v484_v42  ;;  %v741_v44 = vpop.f32.mrb[18].mxu0 }
 0x2a8   :  { %v656_v45 = vpack.c.bf16 %v493_v41, %v493_v41  ;;  %v496_v46 = vadd.f32 %v741_v44, %v620_v15  ;;  %v487_v47 = vpop.f32.mrb[19].mxu0 }
 0x2a9   :  { %v654_v48 = vpack.c.bf16 %v485_v43, %v485_v43  ;;  %v488_v49 = vadd.f32 %v620_v15, %v487_v47 }
 0x2aa   :  { %590 = vst.msk [vmem:[%s957_s7 + $0x28] sm:$0xf] %vm579_vm4, %v656_v45  ;;  %v657_v50 = vpack.c.bf16 %v496_v46, %v496_v46 }
 0x2ab   :  { %588 = vst.msk [vmem:[%s957_s7 + $0x20] sm:$0xf] %vm579_vm4, %v654_v48  ;;  %v655_v51 = vpack.c.bf16 %v488_v49, %v488_v49 }
 0x2ac   :  { %591 = vst.msk [vmem:[%s957_s7 + $0x2c] sm:$0xf] %vm579_vm4, %v657_v50 }
 0x2ad   :  { %589 = vst.msk [vmem:[%s957_s7 + $0x24] sm:$0xf] %vm579_vm4, %v655_v51  ;;  %v744_v52 = vpop.f32.mrb[20].mxu0 }
 0x2ae   :  { %v509_v53 = vadd.f32 %v744_v52, %v620_v15  ;;  %v500_v54 = vpop.f32.mrb[21].mxu0 }
 0x2af   :  { %v501_v55 = vadd.f32 %v620_v15, %v500_v54  ;;  %v745_v56 = vpop.f32.mrb[22].mxu0 }
 0x2b0   :  { %v660_v57 = vpack.c.bf16 %v509_v53, %v509_v53  ;;  %v512_v58 = vadd.f32 %v745_v56, %v620_v15  ;;  %v503_v59 = vpop.f32.mrb[23].mxu0 }
 0x2b1   :  { %v658_v60 = vpack.c.bf16 %v501_v55, %v501_v55  ;;  %v504_v61 = vadd.f32 %v620_v15, %v503_v59 }
 0x2b2   :  { %594 = vst.msk [vmem:[%s957_s7 + $0x38] sm:$0xf] %vm579_vm4, %v660_v57  ;;  %v661_v62 = vpack.c.bf16 %v512_v58, %v512_v58 }
 0x2b3   :  { %592 = vst.msk [vmem:[%s957_s7 + $0x30] sm:$0xf] %vm579_vm4, %v658_v60  ;;  %v659_v63 = vpack.c.bf16 %v504_v61, %v504_v61 }
 0x2b4   :  { %595 = vst.msk [vmem:[%s957_s7 + $0x3c] sm:$0xf] %vm579_vm4, %v661_v62 }
 0x2b5   :  { %593 = vst.msk [vmem:[%s957_s7 + $0x34] sm:$0xf] %vm579_vm4, %v659_v63 }

</bundles_post_ra>
